<compile_context>
chip_gen: v7x
topology: tpu7x:2x2x1
jax: 0.10.0
libtpu: 0.0.40
codegen_flags: <defaults>
</compile_context>

<pallas_src>
import functools

import jax
import jax.numpy as jnp
from jax.experimental import pallas as pl
from jax.experimental.pallas import tpu as pltpu


_VMEM_LIMIT = 48 * 1024 * 1024   # > scoped defaults (16/32 MiB), < v7x 64 MiB phys.


def _round_up(x, m):
    return ((x + m - 1) // m) * m


def _pick_tile(dim, target, align):
    """Largest legal block size <= target for this dim.

    A block dim is legal if it is a multiple of `align` (8 sublane / 128 lane)
    OR equal to the full array dim.  We never let a block exceed the array dim,
    so only the *last* grid block along an axis can be partial (the standard,
    supported boundary case)."""
    if dim <= target:
        return dim
    return max(align, (target // align) * align)


# ---------------------------------------------------------------------------
# Centering, pass 1: global column sums (tiled reduction over N)
# ---------------------------------------------------------------------------
def _colsum_kernel(x_ref, s_ref, *, row_tile, true_rows, mask_rows):
    ni = pl.program_id(1)

    @pl.when(ni == 0)
    def _():
        s_ref[...] = jnp.zeros_like(s_ref)

    x = x_ref[...]
    if mask_rows:
        # Final partial row block may contain unspecified values; zero them so
        # the reduction over N stays exact.  (Cheap VPU work; pass is HBM-bound.)
        row = ni * row_tile + jax.lax.broadcasted_iota(jnp.int32, x.shape, 0)
        x = jnp.where(row < true_rows, x, 0.0)
    s_ref[...] += jnp.sum(x, axis=0, keepdims=True)


# ---------------------------------------------------------------------------
# Centering, pass 2: tiled broadcast subtract (mean = sums * 1/N folded in)
# ---------------------------------------------------------------------------
def _center_kernel(x_ref, s_ref, o_ref, *, inv_n):
    o_ref[...] = x_ref[...] - s_ref[...] * inv_n


def center(x, *, row_tile=1024, col_tile=1024):
    """Returns x - mean(x, axis=0) using two tiled Pallas kernels (no padding)."""
    n, d = x.shape
    x = x.astype(jnp.float32)

    tn = _pick_tile(n, row_tile, 8)
    td = _pick_tile(d, col_tile, 128)
    # v7x megacore: keep >= 2 blocks on the "parallel" feature axis when possible.
    if pl.cdiv(d, td) < 2 and d >= 256:
        td = _round_up(pl.cdiv(d, 2), 128)
    gn, gd = pl.cdiv(n, tn), pl.cdiv(d, td)
    mask_rows = (gn * tn != n)

    # Pass 1: column sums.  Reduction (N) grid axis is last / "arbitrary";
    # the (1, td) output block is resident across it (accumulator pattern).
    sums = pl.pallas_call(
        functools.partial(_colsum_kernel, row_tile=tn, true_rows=n,
                          mask_rows=mask_rows),
        out_shape=jax.ShapeDtypeStruct((1, d), jnp.float32),
        grid_spec=pltpu.PrefetchScalarGridSpec(
            num_scalar_prefetch=0,
            grid=(gd, gn),
            in_specs=[pl.BlockSpec((tn, td), lambda dj, ni: (ni, dj))],
            out_specs=pl.BlockSpec((1, td), lambda dj, ni: (0, dj)),
        ),
        compiler_params=pltpu.CompilerParams(
            dimension_semantics=("parallel", "arbitrary"),
            vmem_limit_bytes=_VMEM_LIMIT),
        cost_estimate=pl.CostEstimate(
            flops=n * d, transcendentals=0,
            bytes_accessed=4 * (n * d + d)),
    )(x)

    # Pass 2: tiled subtract; output is the exact (n, d) array (no slice copy).
    xc = pl.pallas_call(
        functools.partial(_center_kernel, inv_n=1.0 / n),
        out_shape=jax.ShapeDtypeStruct((n, d), jnp.float32),
        grid_spec=pltpu.PrefetchScalarGridSpec(
            num_scalar_prefetch=0,
            grid=(gn, gd),
            in_specs=[pl.BlockSpec((tn, td), lambda i, j: (i, j)),
                      pl.BlockSpec((1, td), lambda i, j: (0, j))],
            out_specs=pl.BlockSpec((tn, td), lambda i, j: (i, j)),
        ),
        compiler_params=pltpu.CompilerParams(
            dimension_semantics=("parallel", "parallel"),
            vmem_limit_bytes=_VMEM_LIMIT),
        cost_estimate=pl.CostEstimate(
            flops=n * d, transcendentals=0,
            bytes_accessed=4 * (2 * n * d + d)),
    )(x, sums)
    return xc


# ---------------------------------------------------------------------------
# Projection matmul: xc @ W, B-resident, bf16 MXU inputs, f32 output accumulator
# ---------------------------------------------------------------------------
def _proj_kernel(a_ref, b_ref, o_ref, *, k_tile, true_k, mask_k):
    ki = pl.program_id(1)

    @pl.when(ki == 0)
    def _():
        o_ref[...] = jnp.zeros_like(o_ref)   # o_ref is the accumulator (f32)

    a = a_ref[...]
    if mask_k:
        # Final partial K block of A may hold unspecified values (0 * NaN would
        # poison the contraction) -> zero them.  B's padded K rows are real zeros.
        col = ki * k_tile + jax.lax.broadcasted_iota(jnp.int32, a.shape, 1)
        a = jnp.where(col < true_k, a, 0.0)
    o_ref[...] += jnp.dot(a.astype(jnp.bfloat16), b_ref[...],
                          preferred_element_type=jnp.float32)


def project(a, b, *, row_tile=256):
    """a @ b.  `a` (big, f32) is streamed from HBM once and cast to bf16 per
    tile on-chip; `b` (small component matrix) is bf16 and held as a single
    VMEM-resident block along its width (no N grid axis)."""
    m, k = a.shape
    k2, ncols = b.shape
    assert k == k2
    a = a.astype(jnp.float32)

    tm = _pick_tile(m, row_tile, 8)
    # Larger K tiles when the resident B block is narrow; smaller when it is
    # wide, to keep the double-buffered working set a few MiB on every chip.
    if ncols <= 512:
        k_target = 2048
    elif ncols <= 2048:
        k_target = 1024
    else:
        k_target = 512
    tk = _pick_tile(k, k_target, 128)
    gm, gk = pl.cdiv(m, tm), pl.cdiv(k, tk)
    k_pad = gk * tk
    mask_k = (k_pad != k)

    bb = b.astype(jnp.bfloat16)
    if k_pad != k:
        bb = jnp.pad(bb, ((0, k_pad - k), (0, 0)))   # small operand, zero K rows

    out = pl.pallas_call(
        functools.partial(_proj_kernel, k_tile=tk, true_k=k, mask_k=mask_k),
        out_shape=jax.ShapeDtypeStruct((m, ncols), jnp.float32),
        grid_spec=pltpu.PrefetchScalarGridSpec(
            num_scalar_prefetch=0,
            grid=(gm, gk),
            in_specs=[pl.BlockSpec((tm, tk), lambda i, kk: (i, kk)),
                      pl.BlockSpec((tk, ncols), lambda i, kk: (kk, 0))],
            out_specs=pl.BlockSpec((tm, ncols), lambda i, kk: (i, 0)),
        ),
        compiler_params=pltpu.CompilerParams(
            dimension_semantics=("parallel", "arbitrary"),
            vmem_limit_bytes=_VMEM_LIMIT),
        cost_estimate=pl.CostEstimate(
            flops=2 * m * ncols * k_pad, transcendentals=0,
            bytes_accessed=4 * m * k + 2 * k_pad * ncols + 4 * m * ncols),
    )(a, bb)
    return out


# ---------------------------------------------------------------------------
# Full PCA forward (matches the torch module semantics)
# ---------------------------------------------------------------------------
def pca_forward(x, k=0.99):
    x = jnp.asarray(x, jnp.float32)

    # 1) center (Pallas, two-pass tiled, no padding/slicing copies)
    xc = center(x)

    # 2) SVD.  torch.svd(x^T).U == right singular vectors of x == Vt.T with the
    #    same singular values, so the explicit N x D transpose is avoided.
    # TODO(synk): SVD has no Pallas equivalent; computed with jnp.linalg.svd.
    _, S, Vt = jnp.linalg.svd(xc, full_matrices=False)

    # 3) component-count selection, device-side.
    #    Torch loop: len_=1; for s in S: if w > reserved: break; w += s; len_ += 1
    #    => len_ = 1 + #{i : sum(S[:i]) <= reserved}, then clipped by slicing.
    reserved_weight = jnp.sum(S) * k
    excl_cumsum = jnp.cumsum(S) - S
    len_dev = 1 + jnp.sum(excl_cumsum <= reserved_weight)
    # Single scalar host read — unavoidable, the output width is data-dependent.
    len_eff = min(int(len_dev), Vt.shape[0])

    # 4) projection (Pallas tiled matmul).  The (D, len) transpose of the tiny
    #    component slice is negligible compared to the removed N x D transpose.
    components = jnp.transpose(Vt[:len_eff, :])
    return project(xc, components)


if __name__ == "__main__":
    key = jax.random.PRNGKey(0)

    # --- small input consistent with the module's forward: 16 samples, 8 features
    x = jax.random.normal(key, (16, 8), dtype=jnp.float32)

    # unit check: centering against plain-JAX reference (exact f32 path)
    xc = jax.block_until_ready(center(x))
    xc_ref = x - jnp.mean(x, axis=0, keepdims=True)
    assert jnp.allclose(xc, xc_ref, atol=1e-5, rtol=1e-5)

    # unit check: projection (bf16 MXU inputs -> bf16-class tolerance vs f32 ref)
    k1, k2 = jax.random.split(key)
    a = jax.random.normal(k1, (16, 8), dtype=jnp.float32)
    b = jax.random.normal(k2, (8, 5), dtype=jnp.float32)
    assert jnp.allclose(project(a, b), a @ b, atol=1e-1, rtol=5e-2)

    # --- medium shapes exercising partial / masked boundary blocks and the
    #     multi-block grids (rows not a tile multiple, features split for v7x)
    k3, k4 = jax.random.split(k1)
    x2 = jax.random.normal(k3, (1030, 384), dtype=jnp.float32)
    xc2 = jax.block_until_ready(center(x2))
    xc2_ref = x2 - jnp.mean(x2, axis=0, keepdims=True)
    assert jnp.allclose(xc2, xc2_ref, atol=1e-4, rtol=1e-4)

    b2 = jax.random.normal(k4, (384, 200), dtype=jnp.float32)
    proj2 = project(x2, b2)
    proj2_ref = jnp.dot(x2.astype(jnp.bfloat16), b2.astype(jnp.bfloat16),
                        preferred_element_type=jnp.float32)
    assert jnp.allclose(proj2, proj2_ref, atol=1e-2, rtol=1e-2)

    # --- full forward ---
    out = jax.block_until_ready(pca_forward(x, k=0.99))

    # sanity: N rows, at most min(N, D) columns, finite values
    assert out.shape[0] == 16 and 1 <= out.shape[1] <= 8
    assert bool(jnp.all(jnp.isfinite(out)))
    print("KERNEL_OK")
</pallas_src>

<mosaic_0001>
module attributes {stable_mosaic.version = 11 : i64} {
  func.func @_colsum_kernel(%arg0: i32, %arg1: i32, %arg2: memref<16x8xf32, #tpu.memory_space<vmem>>, %arg3: memref<1x8xf32, #tpu.memory_space<vmem>>) attributes {dimension_semantics = [#tpu.dimension_semantics<parallel>, #tpu.dimension_semantics<arbitrary>], iteration_bounds = array<i64: 1, 1>, scalar_prefetch = 0 : i64, scratch_operands = 0 : i64, tpu.core_type = #tpu.core_type<tc>, window_params = [{transform_indices = @transform_0, window_bounds = array<i64: 16, 8>}, {transform_indices = @transform_1, window_bounds = array<i64: 1, 8>}]} {
    %c0_i32 = arith.constant 0 : i32
    %0 = arith.cmpi eq, %arg1, %c0_i32 : i32
    %1 = arith.extui %0 : i1 to i32
    %c0_i32_0 = arith.constant 0 : i32
    %2 = arith.cmpi ne, %1, %c0_i32_0 : i32
    scf.if %2 {
      %cst_6 = arith.constant 0.000000e+00 : f32
      %9 = vector.broadcast %cst_6 : f32 to vector<1x8xf32>
      %c0_7 = arith.constant 0 : index
      %c0_8 = arith.constant 0 : index
      %10 = vector.load %arg3[%c0_7, %c0_8] : memref<1x8xf32, #tpu.memory_space<vmem>>, vector<1x8xf32>
      tpu.vector_store %arg3[%c0_7, %c0_8], %9 {strides = array<i32>} : memref<1x8xf32, #tpu.memory_space<vmem>>, vector<1x8xf32>,
    } else {
    }
    %c0 = arith.constant 0 : index
    %c0_1 = arith.constant 0 : index
    %3 = vector.load %arg2[%c0, %c0_1] : memref<16x8xf32, #tpu.memory_space<vmem>>, vector<16x8xf32>
    %c0_2 = arith.constant 0 : index
    %c0_3 = arith.constant 0 : index
    %4 = vector.load %arg3[%c0_2, %c0_3] : memref<1x8xf32, #tpu.memory_space<vmem>>, vector<1x8xf32>
    %cst = arith.constant dense<0.000000e+00> : vector<8xf32>
    %5 = vector.multi_reduction <add>, %3, %cst [0] : vector<16x8xf32> to vector<8xf32>
    %6 = vector.shape_cast %5 : vector<8xf32> to vector<1x8xf32>
    %7 = arith.addf %4, %6 : vector<1x8xf32>
    %c0_4 = arith.constant 0 : index
    %c0_5 = arith.constant 0 : index
    %8 = vector.load %arg3[%c0_4, %c0_5] : memref<1x8xf32, #tpu.memory_space<vmem>>, vector<1x8xf32>
    tpu.vector_store %arg3[%c0_4, %c0_5], %7 {strides = array<i32>} : memref<1x8xf32, #tpu.memory_space<vmem>>, vector<1x8xf32>,
    return
  }
  func.func @transform_0(%arg0: i32, %arg1: i32) -> (i32, i32) {
    %c0_i32 = arith.constant 0 : i32
    return %arg1, %arg0 : i32, i32
  }
  func.func @transform_1(%arg0: i32, %arg1: i32) -> (i32, i32) {
    %c0_i32 = arith.constant 0 : i32
    %c0_i32_0 = arith.constant 0 : i32
    return %c0_i32, %arg0 : i32, i32
  }
}

</mosaic_0001>

<bundles_post_ra>
// kernel: tpu_custom_call.1
= control target key start
LH: loop header
LB: loop body
LE: loop exit
PB: predicated region body
PF: predicated region fallthrough
CT: control target
= control target key end

     0   :  { %vm13_vm0 = vcmask 57344   ;;  %vm18_vm1 = vcmask 64512   ;;  %v71_v2 = vmov 0.0   ;;  %s103_s0 = inlined_call_operand.vmem [shape: f32[16,8], index: 0, kind: input, shape index: {}]   ;;  %s104_s1 = inlined_call_operand.hbm [shape: f32[1,8], index: 1, kind: output, shape index: {}]  }
   0x1   :  { %v15_v0 = vld [vmem:[%s103_s0] sm:$0xff]  ;;  %v16_v1 = vld [vmem:[%s103_s0 + $0x8] sm:$0xff]  ;;  %14 = vst.msk [vmem:[#allocation2] sm:$0x1] %vm13_vm0, %v71_v2 }
   0x2   :  { %v19_v3 = vsel %vm18_vm1, %v15_v0, 0.0  ;;  %v20_v4 = vsel %vm18_vm1, %v16_v1, 0.0 }
   0x3   :  { %6 = vsyncpa [#allocation3], 0  ;;  %v21_v5 = vadd.f32 %v20_v4, %v19_v3  ;;  %s72_s10 = smov [#allocation2]  }
   0x4   :  { %s37_s11 = sshll.u32 %s72_s10, 4  ;;  %s38_s11 = int_to_ptr.vmem [resolvable:$true] %s37_s11 }
   0x5   :  { %v22_v6 = vrot.slane %v21_v5, 4  ;;  %s47_s0 = scalar_lea.vmem %s38_s11, 16  ;;  %s51_s12 = scalar_lea.vmem %s38_s11, 32 }
   0x6   :  { %p48_p0 = scmp.ne.s32.totalorder %s38_s11, %s47_s0  ;;  %p52_p1 = scmp.lt.s32.totalorder %s38_s11, %s38_s11 }
   0x7   :  { %v23_v7 = vadd.f32 %v22_v6, %v21_v5  ;;  %p53_p2 = scmp.lt.s32.totalorder %s51_s12, %s47_s0 }
   0x8   :  { %v17_v11 = vld [vmem:[#allocation2] sm:$0x1] }
   0x9   :  { %v24_v8 = vrot.slane %v23_v7, 2  ;;  %p54_p3 = por %p53_p2, %p52_p1 }
   0xb   :  { %v25_v9 = vadd.f32 %v24_v8, %v23_v7  ;;  %p55_p4 = pnand %p54_p3, %p48_p0 }
   0xd   :  { %v26_v10 = vrot.slane %v25_v9, 1 }
   0xf   :  { %v27_v12 = vadd.f32 %v26_v10, %v25_v9 }
  0x11   :  { %v28_v13 = vadd.f32 %v27_v12, %v17_v11 }
  0x13   :  { %30 = vst.msk [vmem:[#allocation2] sm:$0x1] %vm13_vm0, %v28_v13 }
  0x14   :  { %58 = shalt.err (!%p55_p4)
}
  0x15   :  { %s59_s15 = scalar_lea.hbm %s104_s1, 16 }
  0x16   :  { %p60_p5 = scmp.ne.s32.totalorder %s104_s1, %s59_s15  ;;  %p63_p6 = scmp.lt.u32.totalorder %s59_s15, %s104_s1 }
  0x18   :  { %p65_p7 = pnand %p63_p6, %p60_p5 }
  0x1a   :  { %68 = shalt.err (!%p65_p7)
}
  0x1b   :  { %40 = dma.vmem_to_hbm [thread:$0]  %s38_s11, 16, %s104_s1, [#allocation3]  }
  0x1c   :  { %69 = dma.done.wait [#allocation3], 16  }
  0x1d   :  { %70 = vsyncadd [#allocation3], 4294967280 }
  0x1e   :  { %44 = vsyncpa [#allocation3], 1 }

</bundles_post_ra>
